<compile_context>
chip_gen: v5e
topology: v5e:2x2
jax: 0.10.0
libtpu: 0.0.40
codegen_flags: <defaults>
</compile_context>

<pallas_src>
import jax
import jax.numpy as jnp
import numpy as np
from jax.experimental import pallas as pl
from jax.experimental.pallas import tpu as pltpu

# ---- module constants --------------------------------------------------------
CONV1D_KERNEL = 2
CONV1D_OUT = 5
POOL1D_KERNEL = 2
CONSIDER_TASKS = 3                                       # forced by BN consistency
EDGES_NUM = 4
FU_FEATURES = int(EDGES_NUM * 1.5)                       # 6
BIRATE_TYPE = 4
RESOLUTION_TYPE = 3
OUT_DIM = BIRATE_TYPE + RESOLUTION_TYPE                  # 7
CONV_FEATURES = int((CONSIDER_TASKS - CONV1D_KERNEL + 1) * CONV1D_OUT / POOL1D_KERNEL)  # 5
FC_IN = int(CONV_FEATURES * 2 + FU_FEATURES * 4)         # 34
BN_EPS = 1e-5

# ---- fused / packed layout ----------------------------------------------------
X_DIM = 2 * CONSIDER_TASKS + 4 * EDGES_NUM + 2           # 3+3+16 + bias-1 + pad = 24
BIAS_ROW = 2 * CONSIDER_TASKS + 4 * EDGES_NUM            # 22: constant-1 input column
HALF = 128                                               # lane-aligned half width
H_DIM = 2 * HALF                                         # 256
BIAS_COL = HALF - 1                                      # 127: constant-1 pooled feature
OUT_PAD = 128                                            # lane-dense output store
W1_ROWS = 24                                             # (8-aligned)
W2_ROWS = 128


def _round_up(n, m):
    return ((n + m - 1) // m) * m


# ---- Pallas kernel -----------------------------------------------------------
def acnet_kernel(x_ref, w1_ref, w2_ref, out_ref):
    x = x_ref[...]                                       # (TB, 24)  bf16
    # fused layer 1: all six branches + biases in one native-bf16 MXU pass
    h = jnp.dot(x, w1_ref[...], preferred_element_type=jnp.float32)     # (TB, 256) f32

    # ReLU + MaxPool1d(2) over the two conv positions == max of the two
    # lane-aligned 128-wide halves, then ReLU (ReLU is monotone, so it commutes
    # with max; fc blocks are duplicated in both halves so max is a no-op there).
    pooled = jnp.maximum(jnp.maximum(h[:, 0:HALF], h[:, HALF:H_DIM]), 0.0)  # (TB, 128)

    # final Linear (BN of every branch + final bias folded into W2) + ReLU
    q = jnp.dot(pooled.astype(jnp.bfloat16), w2_ref[...],
                preferred_element_type=jnp.float32)                     # (TB, 128)
    out_ref[...] = jnp.maximum(q, 0.0)


# ---- wrapper -----------------------------------------------------------------
def acnet_forward(s, packed_params, *, tb=256):
    w1, w2 = packed_params
    time_limit, accuracy_demand, band_width, prop_delay, comp_power, storage = s
    B = time_limit.shape[0]
    tl = time_limit[:, 0, :].astype(jnp.float32)         # (B, 3)  squeeze channel dim
    ad = accuracy_demand[:, 0, :].astype(jnp.float32)
    ones = jnp.ones((B, 1), jnp.float32)                 # bias-1 column
    zeros = jnp.zeros((B, 1), jnp.float32)               # pad to 24 columns
    x = jnp.concatenate(
        [tl, ad,
         band_width.astype(jnp.float32), prop_delay.astype(jnp.float32),
         comp_power.astype(jnp.float32), storage.astype(jnp.float32),
         ones, zeros], axis=1).astype(jnp.bfloat16)      # (B, 24) bf16

    # batch tile: 256 fills the v6e/v7x MXU rows and is a multiple of v5e's 128;
    # small batches get a single (8-aligned) tile; ragged tails are zero-padded.
    tb_eff = min(tb, _round_up(B, 8))
    B_pad = _round_up(B, tb_eff)
    if B_pad != B:
        x = jnp.pad(x, ((0, B_pad - B), (0, 0)))
    grid = (B_pad // tb_eff,)

    cost = pl.CostEstimate(
        flops=2 * B_pad * (X_DIM * H_DIM + HALF * OUT_PAD),
        transcendentals=0,
        bytes_accessed=(B_pad * X_DIM * 2 + W1_ROWS * H_DIM * 2
                        + W2_ROWS * OUT_PAD * 2 + B_pad * OUT_PAD * 4))

    q_pad = pl.pallas_call(
        acnet_kernel,
        out_shape=jax.ShapeDtypeStruct((B_pad, OUT_PAD), jnp.float32),
        grid=grid,
        in_specs=[pl.BlockSpec((tb_eff, X_DIM), lambda i: (i, 0)),
                  # weights pinned to block (0,0): DMA'd once, VMEM-resident
                  pl.BlockSpec((W1_ROWS, H_DIM), lambda i: (0, 0)),
                  pl.BlockSpec((W2_ROWS, OUT_PAD), lambda i: (0, 0))],
        out_specs=pl.BlockSpec((tb_eff, OUT_PAD), lambda i: (i, 0)),
        compiler_params=pltpu.CompilerParams(
            dimension_semantics=("parallel",)),          # megacore batch sharding
        cost_estimate=cost,
    )(x, w1, w2)
    return q_pad[:B, :OUT_DIM]                           # (B, 7)


# ---- raw (torch-shaped) parameter construction -------------------------------
def init_raw_params(key):
    def nk():
        nonlocal key
        key, sub = jax.random.split(key)
        return sub

    def bn(n):
        return dict(
            gamma=1.0 + 0.1 * jax.random.normal(nk(), (n,), jnp.float32),
            beta=0.1 * jax.random.normal(nk(), (n,), jnp.float32),
            mean=0.1 * jax.random.normal(nk(), (n,), jnp.float32),
            var=0.5 + 0.5 * jnp.abs(jax.random.normal(nk(), (n,), jnp.float32)),
        )

    def conv():
        return dict(
            w=0.5 * jax.random.normal(nk(), (CONV1D_OUT, 1, CONV1D_KERNEL), jnp.float32),
            b=0.1 * jax.random.normal(nk(), (CONV1D_OUT,), jnp.float32),
            bn=bn(CONV1D_OUT))

    def fc():
        return dict(
            w=0.5 * jax.random.normal(nk(), (FU_FEATURES, EDGES_NUM), jnp.float32),
            b=0.1 * jax.random.normal(nk(), (FU_FEATURES,), jnp.float32),
            bn=bn(FU_FEATURES))

    return dict(conv_tl=conv(), conv_ad=conv(),
                fc_bw=fc(), fc_pd=fc(), fc_cp=fc(), fc_sc=fc(),
                wf=0.3 * jax.random.normal(nk(), (OUT_DIM, FC_IN), jnp.float32),
                bf=0.1 * jax.random.normal(nk(), (OUT_DIM,), jnp.float32))


# ---- host-side fusion / packing into two bf16 parameter slabs -----------------
def pack_params(raw):
    # layout safety: weights must never touch the constant-1 bias lane
    assert FC_IN <= BIAS_COL, "feature columns would overwrite the folded bias lane"
    assert BIAS_ROW < W1_ROWS

    W1 = np.zeros((W1_ROWS, H_DIM), dtype=np.float32)    # layer-1 block-diagonal
    W2 = np.zeros((W2_ROWS, OUT_PAD), dtype=np.float32)  # final Linear (BN folded)

    def place_conv(x_off, col_off, branch):
        w = np.asarray(branch["w"])[:, 0, :]             # (Cout, K)
        b = np.asarray(branch["b"])
        for half, shift in ((0, 0), (HALF, 1)):          # conv position 0 / 1
            for c in range(CONV1D_OUT):
                for k in range(CONV1D_KERNEL):
                    W1[x_off + shift + k, half + col_off + c] = w[c, k]
                W1[BIAS_ROW, half + col_off + c] = b[c]

    def place_fc(x_off, col_off, branch):
        w = np.asarray(branch["w"])                      # (FU, E)
        b = np.asarray(branch["b"])
        for half in (0, HALF):                           # duplicate -> max is a no-op
            W1[x_off:x_off + EDGES_NUM,
               half + col_off:half + col_off + FU_FEATURES] = w.T
            W1[BIAS_ROW, half + col_off:half + col_off + FU_FEATURES] = b

    place_conv(0, 0, raw["conv_tl"])
    place_conv(CONSIDER_TASKS, CONV_FEATURES, raw["conv_ad"])
    x_off, col_off = 2 * CONSIDER_TASKS, 2 * CONV_FEATURES
    for name in ("fc_bw", "fc_pd", "fc_cp", "fc_sc"):
        assert col_off + FU_FEATURES <= BIAS_COL
        place_fc(x_off, col_off, raw[name])
        x_off += EDGES_NUM
        col_off += FU_FEATURES

    # constant-1 feature column (carries the final-layer bias)
    W1[BIAS_ROW, BIAS_COL] = 1.0
    W1[BIAS_ROW, HALF + BIAS_COL] = 1.0

    # fold eval-mode BatchNorm of every branch into the final Linear
    def bn_fold(bn):
        g, b, m, v = (np.asarray(bn[k]) for k in ("gamma", "beta", "mean", "var"))
        scale = g / np.sqrt(v + BN_EPS)
        return scale, b - m * scale

    scales, shifts = [], []
    for name in ("conv_tl", "conv_ad", "fc_bw", "fc_pd", "fc_cp", "fc_sc"):
        s_, t_ = bn_fold(raw[name]["bn"])
        scales.append(s_)
        shifts.append(t_)
    scale = np.concatenate(scales)                       # (34,)
    shift = np.concatenate(shifts)                       # (34,)
    wf = np.asarray(raw["wf"])                           # (7, 34)
    bf = np.asarray(raw["bf"])                           # (7,)

    W2[0:FC_IN, 0:OUT_DIM] = (wf * scale[None, :]).T     # per-feature BN scale folded
    W2[BIAS_COL, 0:OUT_DIM] = bf + shift @ wf.T          # BN shift + final bias folded

    return (jnp.asarray(W1).astype(jnp.bfloat16),
            jnp.asarray(W2).astype(jnp.bfloat16))


# ---- pure-JAX reference (original, unfused module semantics, f32) --------------
def acnet_ref(s, raw):
    tl_in, ad_in, bw, pd, cp, sc = s

    def bn_eval(x, bn):
        return (x - bn["mean"]) / jnp.sqrt(bn["var"] + BN_EPS) * bn["gamma"] + bn["beta"]

    def conv_branch(x3, branch):
        x = x3[:, 0, :]                                  # (B, 3)
        w = branch["w"][:, 0, :]                         # (Cout, K)
        o0 = x[:, 0:CONV1D_KERNEL] @ w.T + branch["b"]
        o1 = x[:, 1:1 + CONV1D_KERNEL] @ w.T + branch["b"]
        pooled = jnp.maximum(jnp.maximum(o0, 0.0), jnp.maximum(o1, 0.0))  # ReLU -> MaxPool
        return bn_eval(pooled, branch["bn"])

    def fc_branch(x, branch):
        return bn_eval(jnp.maximum(x @ branch["w"].T + branch["b"], 0.0), branch["bn"])

    feats = [conv_branch(tl_in, raw["conv_tl"]),
             conv_branch(ad_in, raw["conv_ad"]),
             fc_branch(bw, raw["fc_bw"]),
             fc_branch(pd, raw["fc_pd"]),
             fc_branch(cp, raw["fc_cp"]),
             fc_branch(sc, raw["fc_sc"])]
    inp = jnp.concatenate(feats, axis=1)                 # (B, 34)
    return jnp.maximum(inp @ raw["wf"].T + raw["bf"], 0.0)


# TODO(synk): training-mode BatchNorm (batch statistics) and the epsilon-greedy
# choose_goal() host-side logic are not part of the kernel (the module calls
# self.eval() before inference, so eval-mode BN is what the kernel implements).

if __name__ == "__main__":
    key = jax.random.PRNGKey(0)
    kp, k1, k2, k3, k4, k5, k6 = jax.random.split(key, 7)
    raw = init_raw_params(kp)
    packed = pack_params(raw)

    BATCH = 8
    time_limit = jax.random.normal(k1, (BATCH, 1, CONSIDER_TASKS), jnp.float32)
    accuracy_demand = jax.random.normal(k2, (BATCH, 1, CONSIDER_TASKS), jnp.float32)
    band_width = jax.random.normal(k3, (BATCH, EDGES_NUM), jnp.float32)
    prop_delay = jax.random.normal(k4, (BATCH, EDGES_NUM), jnp.float32)
    comp_power = jax.random.normal(k5, (BATCH, EDGES_NUM), jnp.float32)
    storage = jax.random.normal(k6, (BATCH, EDGES_NUM), jnp.float32)
    s = (time_limit, accuracy_demand, band_width, prop_delay, comp_power, storage)

    # full aligned batch (single tile, no padding)
    q = jax.block_until_ready(acnet_forward(s, packed))
    q_ref = acnet_ref(s, raw)
    np.testing.assert_allclose(np.asarray(q), np.asarray(q_ref), rtol=5e-2, atol=5e-2)
    assert q.shape == (BATCH, OUT_DIM)

    # ragged batch (exercises zero-pad + slice path)
    s5 = tuple(a[:5] for a in s)
    q5 = jax.block_until_ready(acnet_forward(s5, packed))
    q5_ref = acnet_ref(s5, raw)
    np.testing.assert_allclose(np.asarray(q5), np.asarray(q5_ref), rtol=5e-2, atol=5e-2)
    assert q5.shape == (5, OUT_DIM)

    print("KERNEL_OK")
</pallas_src>

<mosaic_0001>
module attributes {stable_mosaic.version = 11 : i64} {
  func.func @acnet_kernel(%arg0: i32, %arg1: memref<8x24xbf16, #tpu.memory_space<vmem>>, %arg2: memref<24x256xbf16, #tpu.memory_space<vmem>>, %arg3: memref<128x128xbf16, #tpu.memory_space<vmem>>, %arg4: memref<8x128xf32, #tpu.memory_space<vmem>>) attributes {dimension_semantics = [#tpu.dimension_semantics<parallel>], iteration_bounds = array<i64: 1>, scalar_prefetch = 0 : i64, scratch_operands = 0 : i64, tpu.core_type = #tpu.core_type<tc>, window_params = [{transform_indices = @transform_0, window_bounds = array<i64: 8, 24>}, {pipeline_mode = #tpu.pipeline_mode<synchronous>, transform_indices = @transform_1, window_bounds = array<i64: 24, 256>}, {pipeline_mode = #tpu.pipeline_mode<synchronous>, transform_indices = @transform_2, window_bounds = array<i64: 128, 128>}, {transform_indices = @transform_3, window_bounds = array<i64: 8, 128>}]} {
    %c0 = arith.constant 0 : index
    %c0_0 = arith.constant 0 : index
    %0 = vector.load %arg1[%c0, %c0_0] : memref<8x24xbf16, #tpu.memory_space<vmem>>, vector<8x24xbf16>
    %c0_1 = arith.constant 0 : index
    %c0_2 = arith.constant 0 : index
    %1 = vector.load %arg2[%c0_1, %c0_2] : memref<24x256xbf16, #tpu.memory_space<vmem>>, vector<24x256xbf16>
    %cst = arith.constant dense<0.000000e+00> : vector<8x256xf32>
    %2 = tpu.matmul %0, %1, %cst {dimension_numbers = #tpu.dot_dimension_numbers<[1], [0], [0], [1], [0, 0, 1, 1], [], []>} : vector<8x24xbf16>, vector<24x256xbf16>, vector<8x256xf32> -> vector<8x256xf32>
    %3 = vector.extract_strided_slice %2 {offsets = [0, 0], sizes = [8, 128], strides = [1, 1]} : vector<8x256xf32> to vector<8x128xf32>
    %4 = vector.extract_strided_slice %2 {offsets = [0, 128], sizes = [8, 128], strides = [1, 1]} : vector<8x256xf32> to vector<8x128xf32>
    %5 = arith.maximumf %3, %4 : vector<8x128xf32>
    %cst_3 = arith.constant 0.000000e+00 : f32
    %6 = vector.broadcast %cst_3 : f32 to vector<8x128xf32>
    %7 = arith.maximumf %5, %6 : vector<8x128xf32>
    %8 = arith.truncf %7 : vector<8x128xf32> to vector<8x128xbf16>
    %c0_4 = arith.constant 0 : index
    %c0_5 = arith.constant 0 : index
    %9 = vector.load %arg3[%c0_4, %c0_5] : memref<128x128xbf16, #tpu.memory_space<vmem>>, vector<128x128xbf16>
    %cst_6 = arith.constant dense<0.000000e+00> : vector<8x128xf32>
    %10 = tpu.matmul %8, %9, %cst_6 {dimension_numbers = #tpu.dot_dimension_numbers<[1], [0], [0], [1], [0, 0, 1, 1], [], []>} : vector<8x128xbf16>, vector<128x128xbf16>, vector<8x128xf32> -> vector<8x128xf32>
    %cst_7 = arith.constant 0.000000e+00 : f32
    %11 = vector.broadcast %cst_7 : f32 to vector<8x128xf32>
    %12 = arith.maximumf %10, %11 : vector<8x128xf32>
    %c0_8 = arith.constant 0 : index
    %c0_9 = arith.constant 0 : index
    %13 = vector.load %arg4[%c0_8, %c0_9] : memref<8x128xf32, #tpu.memory_space<vmem>>, vector<8x128xf32>
    tpu.vector_store %arg4[%c0_8, %c0_9], %12 {strides = array<i32>} : memref<8x128xf32, #tpu.memory_space<vmem>>, vector<8x128xf32>,
    return
  }
  func.func @transform_0(%arg0: i32) -> (i32, i32) {
    %c0_i32 = arith.constant 0 : i32
    %c0_i32_0 = arith.constant 0 : i32
    return %arg0, %c0_i32 : i32, i32
  }
  func.func @transform_1(%arg0: i32) -> (i32, i32) {
    %c0_i32 = arith.constant 0 : i32
    %c0_i32_0 = arith.constant 0 : i32
    %c0_i32_1 = arith.constant 0 : i32
    return %c0_i32, %c0_i32_0 : i32, i32
  }
  func.func @transform_2(%arg0: i32) -> (i32, i32) {
    %c0_i32 = arith.constant 0 : i32
    %c0_i32_0 = arith.constant 0 : i32
    %c0_i32_1 = arith.constant 0 : i32
    return %c0_i32, %c0_i32_0 : i32, i32
  }
  func.func @transform_3(%arg0: i32) -> (i32, i32) {
    %c0_i32 = arith.constant 0 : i32
    %c0_i32_0 = arith.constant 0 : i32
    return %arg0, %c0_i32 : i32, i32
  }
}

</mosaic_0001>

<bundles_post_ra>
// kernel: tpu_custom_call.1
= control target key start
LH: loop header
LB: loop body
LE: loop exit
PB: predicated region body
PF: predicated region fallthrough
CT: control target
= control target key end

     0   :  { %8 = vsyncpa [#allocation3], 0  ;;  %s419_s0 = inlined_call_operand.hbm [shape: bf16[8,24], index: 0, kind: input, shape index: {}]   ;;  %s420_s1 = inlined_call_operand.hbm [shape: bf16[24,256], index: 1, kind: input, shape index: {}]   ;;  %s421_s2 = inlined_call_operand.hbm [shape: bf16[128,128], index: 2, kind: input, shape index: {}]   ;;  %s422_s3 = inlined_call_operand.hbm [shape: f32[8,128], index: 3, kind: output, shape index: {}]  }
   0x1   :  { %9 = vsyncpa [#allocation6], 0  ;;  %s26_s14 = sshll.u32 %s420_s1, 4  ;;  %s27_s14 = int_to_ptr.hbm [resolvable:$true] %s26_s14 }
   0x2   :  { %10 = vsyncpa [#allocation4], 0  ;;  %s379_s15 = smov [#allocation5]   ;;  %s16_s19 = sshll.u32 %s419_s0, 4  ;;  %s17_s19 = int_to_ptr.hbm [resolvable:$true] %s16_s19 }
   0x3   :  { %s28_s16 = sshll.u32 %s379_s15, 4  ;;  %s380_s20 = smov 128   ;;  %s29_s16 = int_to_ptr.vmem [resolvable:$true] %s28_s16 }
   0x4   :  { %s381_s21 = smov 8   ;;  %s382_s22 = smov [#allocation2]  }
   0x5   :  { %34 = dma.hbm_to_vmem [thread:$0]  %s27_s14, 384, %s29_s16, [#allocation6], %s380_s20, %s380_s20, %s381_s21  }
   0x6   :  { %s18_s23 = sshll.u32 %s382_s22, 4  ;;  %s39_s26 = sshll.u32 %s421_s2, 4  ;;  %s19_s23 = int_to_ptr.vmem [resolvable:$true] %s18_s23  ;;  %s40_s26 = int_to_ptr.hbm [resolvable:$true] %s39_s26 }
   0x7   :  { %21 = dma.hbm_to_vmem [thread:$0]  %s17_s19, 64, %s19_s23, [#allocation3]  }
   0x8   :  { %s383_s1 = smov [#allocation7]   ;;  %s384_s28 = smov 64  }
   0x9   :  { %s41_s27 = sshll.u32 %s383_s1, 4  ;;  %s385_s29 = smov 4   ;;  %s42_s27 = int_to_ptr.vmem [resolvable:$true] %s41_s27 }
   0xa   :  { %47 = dma.hbm_to_vmem [thread:$0]  %s40_s26, 1024, %s42_s27, [#allocation6], %s384_s28, %s384_s28, %s385_s29  }
   0xb   :  { %373 = dma.done.wait [#allocation3], 64  }
   0xc   :  { %374 = vsyncadd [#allocation3], 4294967232 }
   0xd   :  { %375 = dma.done.wait [#allocation6], 1408  }
   0xe   :  { %376 = vsyncadd [#allocation6], 4294965888  ;;  %v64_v0 = vld [vmem:[#allocation5 + $0x10] sm:$0xff]  ;;  %vm84_vm0 = vcmask 1043456   ;;  %v219_v3 = vld [vmem:[#allocation5] sm:$0xf] }
   0xf   :  { %v72_v1 = vunpack.c.l.b16 %v64_v0  ;;  %v73_v2 = vunpack.c.h.b16 %v64_v0  ;;  %v268_v4 = vld [vmem:[#allocation7 + $0x38] sm:$0xff]  ;;  %v260_v7 = vld [vmem:[#allocation5 + $0x4] sm:$0xf0]  ;;  %v259_v8 = vld [vmem:[#allocation5 + $0x4] sm:$0xf]  ;;  %vm80_vm1 = vcmask 195584  }
  0x10   :  { %v221_v9 = vld [vmem:[#allocation5 + $0x8] sm:$0xf0]  ;;  %184 = vmatpush.bf16.msra.mxu2 %v268_v4  ;;  %v220_v13 = vor.u32 %v260_v7, %v219_v3  ;;  %v266_v15 = vld [vmem:[#allocation7 + $0x28] sm:$0xff]  ;;  %v61_v16 = vld [vmem:[#allocation2] sm:$0xf]  ;;  %s386_s0 = smov [#allocation8]  }
  0x11   :  { %v76_v5 = vpack.c.b16 %v72_v1, %v72_v1  ;;  %v77_v6 = vpack.c.b16 %v73_v2, %v73_v2  ;;  %v267_v10 = vld [vmem:[#allocation7 + $0x30] sm:$0xff]  ;;  %v224_v14 = vor.u32 %v259_v8, %v221_v9  ;;  %v265_v17 = vld [vmem:[#allocation7 + $0x20] sm:$0xff]  ;;  %v264_v18 = vld [vmem:[#allocation7 + $0x18] sm:$0xff]  ;;  %s204_s2 = sshll.u32 %s386_s0, 4  ;;  %s206_s5 = sshll.u32 %s422_s3, 4  ;;  %s205_s2 = int_to_ptr.vmem [resolvable:$true] %s204_s2  ;;  %s207_s5 = int_to_ptr.hbm [resolvable:$true] %s206_s5 }
  0x12   :  { %v263_v19 = vld [vmem:[#allocation7 + $0x10] sm:$0xff]  ;;  %v262_v20 = vld [vmem:[#allocation7 + $0x8] sm:$0xff]  ;;  %v261_v21 = vld [vmem:[#allocation7] sm:$0xff] }
  0x13   :  { %v86_v11 = vsel %vm84_vm0, %v76_v5, 0  ;;  %v89_v12 = vsel %vm84_vm0, %v77_v6, 0 }
  0x14   :  { %97 = vmatpush.bf16.msra.mxu0 %v86_v11  ;;  %110 = vmatpush.bf16.msra.mxu1 %v89_v12 }
  0x15   :  { %185 = vmatpush.bf16.msra.mxu2 %v267_v10 }
  0x18   :  { %98 = vmatpush.bf16.msra.mxu0 %v220_v13  ;;  %111 = vmatpush.bf16.msra.mxu1 %v224_v14 }
  0x19   :  { %186 = vmatpush.bf16.msra.mxu2 %v266_v15 }
  0x1b   :  { %225 = vmatmul.msk.bf16.vlgmr.msra.gmra.mxu0 %vm80_vm1, %v61_v16  ;;  %226 = vmatmul.msk.bf16.vlgmr.msra.gmra.mxu1 %vm80_vm1, %v61_v16 }
  0x1d   :  { %187 = vmatpush.bf16.msra.mxu2 %v265_v17 }
  0x21   :  { %188 = vmatpush.bf16.msra.mxu2 %v264_v18 }
  0x25   :  { %189 = vmatpush.bf16.msra.mxu2 %v263_v19 }
  0x29   :  { %190 = vmatpush.bf16.msra.mxu2 %v262_v20 }
  0x2d   :  { %191 = vmatpush.bf16.msra.mxu2 %v261_v21 }
  0x98   :  { %v100_v22 = vpop.f32.mrf.mxu0  ;;  %v113_v23 = vpop.f32.mrf.mxu1 }
  0x99   :  { %v117_v24 = vmax.f32 %v100_v22, %v113_v23 }
  0x9b   :  { %v118_v25 = vmax.f32 %v117_v24, 0.0 }
  0x9d   :  { %v119_v26 = vpack.c.bf16 %v118_v25, %v118_v25 }
  0x9f   :  { %192 = vmatmul.bf16.vlgmr.msra.gmra.mxu2 %v119_v26 }
  0xa0   :  { %v102_v27 = vpop.f32.mrf.mxu0  ;;  %v115_v28 = vpop.f32.mrf.mxu1 }
 0x122   :  { %v193_v29 = vpop.f32.mrf.mxu2 }
 0x123   :  { %v197_v30 = vmax.f32 %v193_v29, 0.0 }
 0x125   :  { %198 = vst [vmem:[#allocation8] sm:$0xff] %v197_v30 }
 0x126   :  { %209 = dma.vmem_to_hbm [thread:$0]  %s205_s2, 128, %s207_s5, [#allocation4]  }
 0x12a   :  { %v195_v31 = vpop.f32.mrf.mxu2 }
 0x12b   :  { %377 = dma.done.wait [#allocation4], 128  }
 0x12c   :  { %378 = vsyncadd [#allocation4], 4294967168 }
 0x12d   :  { %214 = vsyncpa [#allocation3], 1 }
 0x12e   :  { %215 = vsyncpa [#allocation6], 1 }
 0x12f   :  { %216 = vsyncpa [#allocation4], 1 }

</bundles_post_ra>
